<compile_context>
chip_gen: v7x
topology: tpu7x:2x2x1
jax: 0.10.0
libtpu: 0.0.40
codegen_flags: <defaults>
</compile_context>

<pallas_src>
import math
import functools

import jax
import jax.numpy as jnp
from jax.experimental import pallas as pl
from jax.experimental.pallas import tpu as pltpu


_VMEM_LIMIT = 32 * 1024 * 1024


# ----------------------------- Pallas kernels -----------------------------

def _attn_kernel(x_ref, w_ref, b_ref, o_ref):
    # One batch element per grid step.  Fused 1x1 q/k/v projection (block-diag
    # weight, scale folded into q) + softmax attention.
    #   x_ref: (1, S, D)  patches, feature order = (pixel, channel), D = P*C
    #   w_ref: (D, 3D)    bf16 block-diagonal q/k/v weights
    #   b_ref: (1, 3D)    f32 q/k/v biases
    #   o_ref: (1, S, D)  bf16 attention output
    D = o_ref.shape[-1]
    x = x_ref[0].astype(jnp.bfloat16)                                   # (S, D)
    qkv = jnp.dot(x, w_ref[...], preferred_element_type=jnp.float32)
    qkv = qkv + b_ref[...]                                              # (S, 3D)
    q = qkv[:, :D].astype(jnp.bfloat16)
    k = qkv[:, D:2 * D].astype(jnp.bfloat16)
    v = qkv[:, 2 * D:].astype(jnp.bfloat16)
    s = jnp.dot(q, k.T, preferred_element_type=jnp.float32)             # (S, S)
    s = s - jnp.max(s, axis=-1, keepdims=True)
    p = jnp.exp(s)
    p = p / jnp.sum(p, axis=-1, keepdims=True)                          # exact
    o = jnp.dot(p.astype(jnp.bfloat16), v, preferred_element_type=jnp.float32)
    o_ref[0] = o.astype(o_ref.dtype)


def _conv3x3_kernel(*refs, H, dilation, neg_slope, has_residual):
    # 3x3 conv + eval-BN + LeakyReLU(0.2) [+ residual], one batch per grid step.
    #   x_ref: (1, Hp, Wp*Cin)  lane-dense padded image row-slab
    #   w_ref: (3, Wp*Cin, W*Cout) banded weight slabs (one per kernel row kh)
    #   o_ref: (1, H, W*Cout)   lane-dense output
    if has_residual:
        x_ref, w_ref, sc_ref, sh_ref, res_ref, o_ref = refs
    else:
        x_ref, w_ref, sc_ref, sh_ref, o_ref = refs
        res_ref = None

    n_out = o_ref.shape[-1]
    acc = jnp.zeros((H, n_out), jnp.float32)
    for kh in range(3):                                   # static, unrolled
        xs = x_ref[0, kh * dilation:kh * dilation + H, :].astype(jnp.bfloat16)
        acc = acc + jnp.dot(xs, w_ref[kh], preferred_element_type=jnp.float32)
    y = acc * sc_ref[...] + sh_ref[...]                   # conv bias folded in
    y = jnp.where(y > 0, y, neg_slope * y)                # LeakyReLU(0.2)
    if has_residual:
        y = y + res_ref[0]
    o_ref[0] = y.astype(o_ref.dtype)


# ------------------------------ JAX wrappers -------------------------------

def fused_patch_attention(x_patch, w_qkv_blk, b_qkv_blk):
    """x_patch: (B, S, D) f32.  Returns (B, S, D) bf16 attention output."""
    B, S, D = x_patch.shape
    return pl.pallas_call(
        _attn_kernel,
        out_shape=jax.ShapeDtypeStruct((B, S, D), jnp.bfloat16),
        grid=(B,),
        in_specs=[pl.BlockSpec((1, S, D), lambda b: (b, 0, 0)),
                  pl.BlockSpec((D, 3 * D), lambda b: (0, 0)),
                  pl.BlockSpec((1, 3 * D), lambda b: (0, 0))],
        out_specs=pl.BlockSpec((1, S, D), lambda b: (b, 0, 0)),
        compiler_params=pltpu.CompilerParams(
            dimension_semantics=("parallel",),
            vmem_limit_bytes=_VMEM_LIMIT),
    )(x_patch, w_qkv_blk, b_qkv_blk)


def conv3x3_bn_lrelu(x_nhwc, layer, *, padding, dilation, residual=None,
                     out_dtype=jnp.float32):
    """Conv2d(3x3, pad, dil) + BatchNorm(eval) + LeakyReLU(0.2) [+ residual].

    x: (B,H,W,C) NHWC.  `layer` is a prepared dict with lane-dense banded
    weight slabs (3, Wp*Cin, W*Cout) bf16 and BN scale/shift rows (1, W*Cout).
    Returns (B,H,W,Cout) NHWC in `out_dtype`.
    """
    B, H, W, C = x_nhwc.shape
    w_band = layer["w_band"]
    Cout = w_band.shape[-1] // W
    Hp, Wp = H + 2 * padding, W + 2 * padding

    x_pad = jnp.pad(x_nhwc,
                    ((0, 0), (padding, padding), (padding, padding), (0, 0)))
    x_pad = x_pad.reshape(B, Hp, Wp * C)

    kernel = functools.partial(_conv3x3_kernel, H=H, dilation=dilation,
                               neg_slope=0.2,
                               has_residual=residual is not None)
    in_specs = [pl.BlockSpec((1, Hp, Wp * C), lambda b: (b, 0, 0)),
                pl.BlockSpec((3, Wp * C, W * Cout), lambda b: (0, 0, 0)),
                pl.BlockSpec((1, W * Cout), lambda b: (0, 0)),
                pl.BlockSpec((1, W * Cout), lambda b: (0, 0))]
    args = [x_pad, w_band, layer["scale_row"], layer["shift_row"]]
    if residual is not None:
        in_specs.append(pl.BlockSpec((1, H, W * Cout), lambda b: (b, 0, 0)))
        args.append(residual.reshape(B, H, W * Cout))

    out = pl.pallas_call(
        kernel,
        out_shape=jax.ShapeDtypeStruct((B, H, W * Cout), out_dtype),
        grid=(B,),
        in_specs=in_specs,
        out_specs=pl.BlockSpec((1, H, W * Cout), lambda b: (b, 0, 0)),
        compiler_params=pltpu.CompilerParams(
            dimension_semantics=("parallel",),
            vmem_limit_bytes=_VMEM_LIMIT),
    )(*args)
    return out.reshape(B, H, W, Cout)


# ----------------------- patch layout (XLA glue, tiny) ----------------------

def patchify_nhwc(x, height, width):
    # Feature order inside a patch = (ph, pw, c); attention is invariant to any
    # fixed feature permutation applied consistently to q/k/v and inverted on
    # the output, so this matches the PyTorch (c, ph, pw) ordering exactly.
    b, H, W, C = x.shape
    oh, ow = H // height, W // width
    x = x.reshape(b, oh, height, ow, width, C)
    x = jnp.transpose(x, (0, 1, 3, 2, 4, 5))       # (b, oh, ow, ph, pw, c)
    return x.reshape(b, oh * ow, height * width * C)


def unpatchify_nhwc(y, H, W, C, height, width):
    b = y.shape[0]
    oh, ow = H // height, W // width
    y = y.reshape(b, oh, ow, height, width, C)
    y = jnp.transpose(y, (0, 1, 3, 2, 4, 5))       # (b, oh, ph, ow, pw, c)
    return y.reshape(b, H, W, C)


# --------------------- one-time parameter preparation ----------------------

def _build_conv_band(wconv, bias, bn_scale, bn_shift, *, W, padding, dilation):
    # Banded weight slabs: w_band[kh, wp*Cin+ci, w0*Cout+co] =
    #   wconv[kh, kw, ci, co]  iff  wp == w0 + kw*dilation  (else 0).
    assert padding == dilation, "banded formulation assumes 'same' conv"
    C, Cout = wconv.shape[2], wconv.shape[3]
    Wp = W + 2 * padding
    sel = (jnp.arange(Wp)[None, :, None] ==
           (jnp.arange(W)[None, None, :] +
            dilation * jnp.arange(3)[:, None, None])).astype(wconv.dtype)
    w_band = jnp.einsum("kpw,hkio->hpiwo", sel, wconv)       # (3,Wp,Cin,W,Cout)
    w_band = w_band.reshape(3, Wp * C, W * Cout).astype(jnp.bfloat16)
    scale_row = jnp.tile(bn_scale, W).reshape(1, W * Cout)
    shift_row = jnp.tile(bn_shift + bias * bn_scale, W).reshape(1, W * Cout)
    return {"w_band": w_band, "scale_row": scale_row, "shift_row": shift_row}


def prepare_params(params, c, h, w, patchsize):
    """Hoisted preprocessing: run ONCE, outside the jitted forward."""
    width, height = patchsize
    P = height * width
    D = c * P
    inv_sqrt_d = 1.0 / math.sqrt(D)

    # Block-diagonal q/k/v weights: 1x1 conv per pixel of a flattened patch.
    eye_p = jnp.eye(P, dtype=jnp.float32)
    wq_b = jnp.kron(eye_p, params["wq"] * inv_sqrt_d)        # scale folded in
    wk_b = jnp.kron(eye_p, params["wk"])
    wv_b = jnp.kron(eye_p, params["wv"])
    w_qkv = jnp.concatenate([wq_b, wk_b, wv_b], axis=1).astype(jnp.bfloat16)
    b_qkv = jnp.concatenate([jnp.tile(params["bq"] * inv_sqrt_d, P),
                             jnp.tile(params["bk"], P),
                             jnp.tile(params["bv"], P)]).reshape(1, 3 * D)

    return {
        "w_qkv_blk": w_qkv,                                  # (D, 3D) bf16
        "b_qkv_blk": b_qkv,                                  # (1, 3D) f32
        "out": _build_conv_band(params["w_out"], params["b_out"],
                                params["sc_out"], params["sh_out"],
                                W=w, padding=1, dilation=1),
        "ff1": _build_conv_band(params["w_ff1"], params["b_ff1"],
                                params["sc_ff1"], params["sh_ff1"],
                                W=w, padding=2, dilation=2),
        "ff2": _build_conv_band(params["w_ff2"], params["b_ff2"],
                                params["sc_ff2"], params["sh_ff2"],
                                W=w, padding=1, dilation=1),
    }


# ------------------------------- forward pass -------------------------------

def transformer_block(rgb, prep, patchsize):
    b, c, h, w = rgb.shape
    width, height = patchsize                      # PyTorch: width, height = patchsize

    x = jnp.transpose(rgb, (0, 2, 3, 1))           # NHWC once on entry (residual)
    xp = patchify_nhwc(x, height, width)           # (B, S, D), D = C*height*width

    # Fused q/k/v projection + softmax attention (one kernel, grid over B).
    y = fused_patch_attention(xp, prep["w_qkv_blk"], prep["b_qkv_blk"])
    y_img = unpatchify_nhwc(y, h, w, c, height, width)   # (B,H,W,C) bf16

    # output_linear (conv+BN+LReLU) with the rgb residual fused into the kernel.
    output = conv3x3_bn_lrelu(y_img, prep["out"], padding=1, dilation=1,
                              residual=x, out_dtype=jnp.float32)

    # FeedForward2D: dilated conv (bf16 intermediate), then conv + fused residual.
    ff = conv3x3_bn_lrelu(output, prep["ff1"], padding=2, dilation=2,
                          out_dtype=jnp.bfloat16)
    output = conv3x3_bn_lrelu(ff, prep["ff2"], padding=1, dilation=1,
                              residual=output, out_dtype=jnp.float32)

    return jnp.transpose(output, (0, 3, 1, 2))     # back to NCHW once on exit


# ------------------------------ parameters ---------------------------------

def _bn_fold(key, c):
    k1, k2, k3, k4 = jax.random.split(key, 4)
    gamma = 1.0 + 0.1 * jax.random.normal(k1, (c,), jnp.float32)
    beta = 0.1 * jax.random.normal(k2, (c,), jnp.float32)
    mean = 0.1 * jax.random.normal(k3, (c,), jnp.float32)
    var = jax.random.uniform(k4, (c,), jnp.float32, 0.5, 1.5)
    scale = gamma / jnp.sqrt(var + 1e-5)
    shift = beta - mean * scale
    return scale, shift


def init_params(key, c):
    ks = jax.random.split(key, 12)
    s1 = 1.0 / math.sqrt(c)
    s3 = 1.0 / math.sqrt(9 * c)
    p = {}
    p["wq"] = s1 * jax.random.normal(ks[0], (c, c), jnp.float32)
    p["bq"] = 0.01 * jax.random.normal(ks[1], (c,), jnp.float32)
    p["wk"] = s1 * jax.random.normal(ks[2], (c, c), jnp.float32)
    p["bk"] = 0.01 * jax.random.normal(ks[3], (c,), jnp.float32)
    p["wv"] = s1 * jax.random.normal(ks[4], (c, c), jnp.float32)
    p["bv"] = 0.01 * jax.random.normal(ks[5], (c,), jnp.float32)
    for name, kk in (("out", ks[6]), ("ff1", ks[7]), ("ff2", ks[8])):
        ka, kb, kc = jax.random.split(kk, 3)
        p[f"w_{name}"] = s3 * jax.random.normal(ka, (3, 3, c, c), jnp.float32)
        p[f"b_{name}"] = 0.01 * jax.random.normal(kb, (c,), jnp.float32)
        sc, sh = _bn_fold(kc, c)
        p[f"sc_{name}"] = sc
        p[f"sh_{name}"] = sh
    return p


# --------------------------------- main -------------------------------------

if __name__ == "__main__":
    B, C, H, W = 2, 8, 16, 16      # small, consistent with the module
    patchsize = (4, 4)             # (width, height); D = C*4*4 = 128

    key = jax.random.PRNGKey(0)
    k_x, k_p = jax.random.split(key)
    rgb = jax.random.normal(k_x, (B, C, H, W), jnp.float32)   # NCHW input
    params = init_params(k_p, C)

    prep = prepare_params(params, C, H, W, patchsize)  # one-time, outside jit

    fwd = jax.jit(functools.partial(transformer_block, patchsize=patchsize))
    out = fwd(rgb, prep)
    jax.block_until_ready(out)
    assert out.shape == (B, C, H, W) and out.dtype == jnp.float32
    print("KERNEL_OK")
</pallas_src>

<mosaic_0001>
module attributes {stable_mosaic.version = 11 : i64} {
  func.func @_attn_kernel(%arg0: i32, %arg1: memref<1x16x128xf32, #tpu.memory_space<vmem>>, %arg2: memref<128x384xbf16, #tpu.memory_space<vmem>>, %arg3: memref<1x384xf32, #tpu.memory_space<vmem>>, %arg4: memref<1x16x128xbf16, #tpu.memory_space<vmem>>) attributes {dimension_semantics = [#tpu.dimension_semantics<parallel>], iteration_bounds = array<i64: 2>, scalar_prefetch = 0 : i64, scratch_operands = 0 : i64, tpu.core_type = #tpu.core_type<tc>, window_params = [{transform_indices = @transform_0, window_bounds = array<i64: 1, 16, 128>}, {pipeline_mode = #tpu.pipeline_mode<synchronous>, transform_indices = @transform_1, window_bounds = array<i64: 128, 384>}, {pipeline_mode = #tpu.pipeline_mode<synchronous>, transform_indices = @transform_2, window_bounds = array<i64: 1, 384>}, {transform_indices = @transform_3, window_bounds = array<i64: 1, 16, 128>}]} {
    %c0 = arith.constant 0 : index
    %c0_0 = arith.constant 0 : index
    %c0_1 = arith.constant 0 : index
    %0 = vector.load %arg1[%c0, %c0_0, %c0_1] : memref<1x16x128xf32, #tpu.memory_space<vmem>>, vector<1x16x128xf32>
    %1 = vector.shape_cast %0 : vector<1x16x128xf32> to vector<16x128xf32>
    %2 = arith.truncf %1 : vector<16x128xf32> to vector<16x128xbf16>
    %c0_2 = arith.constant 0 : index
    %c0_3 = arith.constant 0 : index
    %3 = vector.load %arg2[%c0_2, %c0_3] : memref<128x384xbf16, #tpu.memory_space<vmem>>, vector<128x384xbf16>
    %cst = arith.constant dense<0.000000e+00> : vector<16x384xf32>
    %4 = tpu.matmul %2, %3, %cst {dimension_numbers = #tpu.dot_dimension_numbers<[1], [0], [0], [1], [0, 0, 1, 1], [], []>} : vector<16x128xbf16>, vector<128x384xbf16>, vector<16x384xf32> -> vector<16x384xf32>
    %c0_4 = arith.constant 0 : index
    %c0_5 = arith.constant 0 : index
    %5 = vector.load %arg3[%c0_4, %c0_5] : memref<1x384xf32, #tpu.memory_space<vmem>>, vector<1x384xf32>
    %6 = vector.broadcast %5 : vector<1x384xf32> to vector<16x384xf32>
    %7 = arith.addf %4, %6 : vector<16x384xf32>
    %8 = vector.extract_strided_slice %7 {offsets = [0, 0], sizes = [16, 128], strides = [1, 1]} : vector<16x384xf32> to vector<16x128xf32>
    %9 = arith.truncf %8 : vector<16x128xf32> to vector<16x128xbf16>
    %10 = vector.extract_strided_slice %7 {offsets = [0, 128], sizes = [16, 128], strides = [1, 1]} : vector<16x384xf32> to vector<16x128xf32>
    %11 = arith.truncf %10 : vector<16x128xf32> to vector<16x128xbf16>
    %12 = vector.extract_strided_slice %7 {offsets = [0, 256], sizes = [16, 128], strides = [1, 1]} : vector<16x384xf32> to vector<16x128xf32>
    %13 = arith.truncf %12 : vector<16x128xf32> to vector<16x128xbf16>
    %14 = tpu.transpose %11, [1, 0] : vector<16x128xbf16> -> vector<128x16xbf16>
    %cst_6 = arith.constant dense<0.000000e+00> : vector<16x16xf32>
    %15 = tpu.matmul %9, %14, %cst_6 {dimension_numbers = #tpu.dot_dimension_numbers<[1], [0], [0], [1], [0, 0, 1, 1], [], []>} : vector<16x128xbf16>, vector<128x16xbf16>, vector<16x16xf32> -> vector<16x16xf32>
    %cst_7 = arith.constant dense<0xFF800000> : vector<16xf32>
    %16 = vector.multi_reduction <maximumf>, %15, %cst_7 [1] : vector<16x16xf32> to vector<16xf32>
    %17 = vector.shape_cast %16 : vector<16xf32> to vector<16x1xf32>
    %18 = vector.broadcast %17 : vector<16x1xf32> to vector<16x16xf32>
    %19 = arith.subf %15, %18 : vector<16x16xf32>
    %20 = math.exp %19 : vector<16x16xf32>
    %cst_8 = arith.constant dense<0.000000e+00> : vector<16xf32>
    %21 = vector.multi_reduction <add>, %20, %cst_8 [1] : vector<16x16xf32> to vector<16xf32>
    %22 = vector.shape_cast %21 : vector<16xf32> to vector<16x1xf32>
    %23 = vector.broadcast %22 : vector<16x1xf32> to vector<16x16xf32>
    %24 = arith.divf %20, %23 : vector<16x16xf32>
    %25 = arith.truncf %24 : vector<16x16xf32> to vector<16x16xbf16>
    %cst_9 = arith.constant dense<0.000000e+00> : vector<16x128xf32>
    %26 = tpu.matmul %25, %13, %cst_9 {dimension_numbers = #tpu.dot_dimension_numbers<[1], [0], [0], [1], [0, 0, 1, 1], [], []>} : vector<16x16xbf16>, vector<16x128xbf16>, vector<16x128xf32> -> vector<16x128xf32>
    %27 = arith.truncf %26 : vector<16x128xf32> to vector<16x128xbf16>
    %c0_10 = arith.constant 0 : index
    %c0_11 = arith.constant 0 : index
    %c0_12 = arith.constant 0 : index
    %28 = vector.load %arg4[%c0_10, %c0_11, %c0_12] : memref<1x16x128xbf16, #tpu.memory_space<vmem>>, vector<1x16x128xbf16>
    %29 = vector.shape_cast %28 : vector<1x16x128xbf16> to vector<16x128xbf16>
    %30 = vector.shape_cast %27 : vector<16x128xbf16> to vector<1x16x128xbf16>
    tpu.vector_store %arg4[%c0_10, %c0_11, %c0_12], %30 {strides = array<i32>} : memref<1x16x128xbf16, #tpu.memory_space<vmem>>, vector<1x16x128xbf16>,
    return
  }
  func.func @transform_0(%arg0: i32) -> (i32, i32, i32) {
    %c0_i32 = arith.constant 0 : i32
    %c0_i32_0 = arith.constant 0 : i32
    %c0_i32_1 = arith.constant 0 : i32
    return %arg0, %c0_i32, %c0_i32_0 : i32, i32, i32
  }
  func.func @transform_1(%arg0: i32) -> (i32, i32) {
    %c0_i32 = arith.constant 0 : i32
    %c0_i32_0 = arith.constant 0 : i32
    %c0_i32_1 = arith.constant 0 : i32
    return %c0_i32, %c0_i32_0 : i32, i32
  }
  func.func @transform_2(%arg0: i32) -> (i32, i32) {
    %c0_i32 = arith.constant 0 : i32
    %c0_i32_0 = arith.constant 0 : i32
    %c0_i32_1 = arith.constant 0 : i32
    return %c0_i32, %c0_i32_0 : i32, i32
  }
  func.func @transform_3(%arg0: i32) -> (i32, i32, i32) {
    %c0_i32 = arith.constant 0 : i32
    %c0_i32_0 = arith.constant 0 : i32
    %c0_i32_1 = arith.constant 0 : i32
    return %arg0, %c0_i32, %c0_i32_0 : i32, i32, i32
  }
}

module attributes {stable_mosaic.version = 11 : i64} {
  func.func @_conv3x3_kernel(%arg0: i32, %arg1: memref<1x18x144xbf16, #tpu.memory_space<vmem>>, %arg2: memref<3x144x128xbf16, #tpu.memory_space<vmem>>, %arg3: memref<1x128xf32, #tpu.memory_space<vmem>>, %arg4: memref<1x128xf32, #tpu.memory_space<vmem>>, %arg5: memref<1x16x128xf32, #tpu.memory_space<vmem>>, %arg6: memref<1x16x128xf32, #tpu.memory_space<vmem>>) attributes {dimension_semantics = [#tpu.dimension_semantics<parallel>], iteration_bounds = array<i64: 2>, scalar_prefetch = 0 : i64, scratch_operands = 0 : i64, tpu.core_type = #tpu.core_type<tc>, window_params = [{transform_indices = @transform_0, window_bounds = array<i64: 1, 18, 144>}, {pipeline_mode = #tpu.pipeline_mode<synchronous>, transform_indices = @transform_1, window_bounds = array<i64: 3, 144, 128>}, {pipeline_mode = #tpu.pipeline_mode<synchronous>, transform_indices = @transform_2, window_bounds = array<i64: 1, 128>}, {pipeline_mode = #tpu.pipeline_mode<synchronous>, transform_indices = @transform_3, window_bounds = array<i64: 1, 128>}, {transform_indices = @transform_4, window_bounds = array<i64: 1, 16, 128>}, {transform_indices = @transform_5, window_bounds = array<i64: 1, 16, 128>}]} {
    %cst = arith.constant 0.000000e+00 : f32
    %0 = vector.broadcast %cst : f32 to vector<16x128xf32>
    %c0 = arith.constant 0 : index
    %c0_0 = arith.constant 0 : index
    %c0_1 = arith.constant 0 : index
    %1 = vector.load %arg1[%c0, %c0_0, %c0_1] : memref<1x18x144xbf16, #tpu.memory_space<vmem>>, vector<1x16x144xbf16>
    %2 = vector.shape_cast %1 : vector<1x16x144xbf16> to vector<16x144xbf16>
    %c0_2 = arith.constant 0 : index
    %c0_3 = arith.constant 0 : index
    %c0_4 = arith.constant 0 : index
    %3 = vector.load %arg2[%c0_2, %c0_3, %c0_4] : memref<3x144x128xbf16, #tpu.memory_space<vmem>>, vector<1x144x128xbf16>
    %4 = vector.shape_cast %3 : vector<1x144x128xbf16> to vector<144x128xbf16>
    %cst_5 = arith.constant dense<0.000000e+00> : vector<16x128xf32>
    %5 = tpu.matmul %2, %4, %cst_5 {dimension_numbers = #tpu.dot_dimension_numbers<[1], [0], [0], [1], [0, 0, 1, 1], [], []>} : vector<16x144xbf16>, vector<144x128xbf16>, vector<16x128xf32> -> vector<16x128xf32>
    %6 = arith.addf %0, %5 : vector<16x128xf32>
    %c0_6 = arith.constant 0 : index
    %c1 = arith.constant 1 : index
    %c0_7 = arith.constant 0 : index
    %7 = vector.load %arg1[%c0_6, %c1, %c0_7] : memref<1x18x144xbf16, #tpu.memory_space<vmem>>, vector<1x16x144xbf16>
    %8 = vector.shape_cast %7 : vector<1x16x144xbf16> to vector<16x144xbf16>
    %c1_8 = arith.constant 1 : index
    %c0_9 = arith.constant 0 : index
    %c0_10 = arith.constant 0 : index
    %9 = vector.load %arg2[%c1_8, %c0_9, %c0_10] : memref<3x144x128xbf16, #tpu.memory_space<vmem>>, vector<1x144x128xbf16>
    %10 = vector.shape_cast %9 : vector<1x144x128xbf16> to vector<144x128xbf16>
    %cst_11 = arith.constant dense<0.000000e+00> : vector<16x128xf32>
    %11 = tpu.matmul %8, %10, %cst_11 {dimension_numbers = #tpu.dot_dimension_numbers<[1], [0], [0], [1], [0, 0, 1, 1], [], []>} : vector<16x144xbf16>, vector<144x128xbf16>, vector<16x128xf32> -> vector<16x128xf32>
    %12 = arith.addf %6, %11 : vector<16x128xf32>
    %c0_12 = arith.constant 0 : index
    %c2 = arith.constant 2 : index
    %c0_13 = arith.constant 0 : index
    %13 = vector.load %arg1[%c0_12, %c2, %c0_13] : memref<1x18x144xbf16, #tpu.memory_space<vmem>>, vector<1x16x144xbf16>
    %14 = vector.shape_cast %13 : vector<1x16x144xbf16> to vector<16x144xbf16>
    %c2_14 = arith.constant 2 : index
    %c0_15 = arith.constant 0 : index
    %c0_16 = arith.constant 0 : index
    %15 = vector.load %arg2[%c2_14, %c0_15, %c0_16] : memref<3x144x128xbf16, #tpu.memory_space<vmem>>, vector<1x144x128xbf16>
    %16 = vector.shape_cast %15 : vector<1x144x128xbf16> to vector<144x128xbf16>
    %cst_17 = arith.constant dense<0.000000e+00> : vector<16x128xf32>
    %17 = tpu.matmul %14, %16, %cst_17 {dimension_numbers = #tpu.dot_dimension_numbers<[1], [0], [0], [1], [0, 0, 1, 1], [], []>} : vector<16x144xbf16>, vector<144x128xbf16>, vector<16x128xf32> -> vector<16x128xf32>
    %18 = arith.addf %12, %17 : vector<16x128xf32>
    %c0_18 = arith.constant 0 : index
    %c0_19 = arith.constant 0 : index
    %19 = vector.load %arg3[%c0_18, %c0_19] : memref<1x128xf32, #tpu.memory_space<vmem>>, vector<1x128xf32>
    %20 = vector.broadcast %19 : vector<1x128xf32> to vector<16x128xf32>
    %21 = arith.mulf %18, %20 : vector<16x128xf32>
    %c0_20 = arith.constant 0 : index
    %c0_21 = arith.constant 0 : index
    %22 = vector.load %arg4[%c0_20, %c0_21] : memref<1x128xf32, #tpu.memory_space<vmem>>, vector<1x128xf32>
    %23 = vector.broadcast %22 : vector<1x128xf32> to vector<16x128xf32>
    %24 = arith.addf %21, %23 : vector<16x128xf32>
    %cst_22 = arith.constant 0.000000e+00 : f32
    %25 = vector.broadcast %cst_22 : f32 to vector<16x128xf32>
    %26 = arith.cmpf ogt, %24, %25 : vector<16x128xf32>
    %cst_23 = arith.constant 2.000000e-01 : f32
    %27 = vector.broadcast %cst_23 : f32 to vector<16x128xf32>
    %28 = arith.mulf %27, %24 : vector<16x128xf32>
    %29 = arith.select %26, %24, %28 : vector<16x128xi1>, vector<16x128xf32>
    %c0_24 = arith.constant 0 : index
    %c0_25 = arith.constant 0 : index
    %c0_26 = arith.constant 0 : index
    %30 = vector.load %arg5[%c0_24, %c0_25, %c0_26] : memref<1x16x128xf32, #tpu.memory_space<vmem>>, vector<1x16x128xf32>
    %31 = vector.shape_cast %30 : vector<1x16x128xf32> to vector<16x128xf32>
    %32 = arith.addf %29, %31 : vector<16x128xf32>
    %c0_27 = arith.constant 0 : index
    %c0_28 = arith.constant 0 : index
    %c0_29 = arith.constant 0 : index
    %33 = vector.load %arg6[%c0_27, %c0_28, %c0_29] : memref<1x16x128xf32, #tpu.memory_space<vmem>>, vector<1x16x128xf32>
    %34 = vector.shape_cast %33 : vector<1x16x128xf32> to vector<16x128xf32>
    %35 = vector.shape_cast %32 : vector<16x128xf32> to vector<1x16x128xf32>
    tpu.vector_store %arg6[%c0_27, %c0_28, %c0_29], %35 {strides = array<i32>} : memref<1x16x128xf32, #tpu.memory_space<vmem>>, vector<1x16x128xf32>,
    return
  }
  func.func @transform_0(%arg0: i32) -> (i32, i32, i32) {
    %c0_i32 = arith.constant 0 : i32
    %c0_i32_0 = arith.constant 0 : i32
    %c0_i32_1 = arith.constant 0 : i32
    return %arg0, %c0_i32, %c0_i32_0 : i32, i32, i32
  }
  func.func @transform_1(%arg0: i32) -> (i32, i32, i32) {
    %c0_i32 = arith.constant 0 : i32
    %c0_i32_0 = arith.constant 0 : i32
    %c0_i32_1 = arith.constant 0 : i32
    %c0_i32_2 = arith.constant 0 : i32
    return %c0_i32, %c0_i32_0, %c0_i32_1 : i32, i32, i32
  }
  func.func @transform_2(%arg0: i32) -> (i32, i32) {
    %c0_i32 = arith.constant 0 : i32
    %c0_i32_0 = arith.constant 0 : i32
    %c0_i32_1 = arith.constant 0 : i32
    return %c0_i32, %c0_i32_0 : i32, i32
  }
  func.func @transform_3(%arg0: i32) -> (i32, i32) {
    %c0_i32 = arith.constant 0 : i32
    %c0_i32_0 = arith.constant 0 : i32
    %c0_i32_1 = arith.constant 0 : i32
    return %c0_i32, %c0_i32_0 : i32, i32
  }
  func.func @transform_4(%arg0: i32) -> (i32, i32, i32) {
    %c0_i32 = arith.constant 0 : i32
    %c0_i32_0 = arith.constant 0 : i32
    %c0_i32_1 = arith.constant 0 : i32
    return %arg0, %c0_i32, %c0_i32_0 : i32, i32, i32
  }
  func.func @transform_5(%arg0: i32) -> (i32, i32, i32) {
    %c0_i32 = arith.constant 0 : i32
    %c0_i32_0 = arith.constant 0 : i32
    %c0_i32_1 = arith.constant 0 : i32
    return %arg0, %c0_i32, %c0_i32_0 : i32, i32, i32
  }
}

module attributes {stable_mosaic.version = 11 : i64} {
  func.func @_conv3x3_kernel(%arg0: i32, %arg1: memref<1x20x160xf32, #tpu.memory_space<vmem>>, %arg2: memref<3x160x128xbf16, #tpu.memory_space<vmem>>, %arg3: memref<1x128xf32, #tpu.memory_space<vmem>>, %arg4: memref<1x128xf32, #tpu.memory_space<vmem>>, %arg5: memref<1x16x128xbf16, #tpu.memory_space<vmem>>) attributes {dimension_semantics = [#tpu.dimension_semantics<parallel>], iteration_bounds = array<i64: 2>, scalar_prefetch = 0 : i64, scratch_operands = 0 : i64, tpu.core_type = #tpu.core_type<tc>, window_params = [{transform_indices = @transform_0, window_bounds = array<i64: 1, 20, 160>}, {pipeline_mode = #tpu.pipeline_mode<synchronous>, transform_indices = @transform_1, window_bounds = array<i64: 3, 160, 128>}, {pipeline_mode = #tpu.pipeline_mode<synchronous>, transform_indices = @transform_2, window_bounds = array<i64: 1, 128>}, {pipeline_mode = #tpu.pipeline_mode<synchronous>, transform_indices = @transform_3, window_bounds = array<i64: 1, 128>}, {transform_indices = @transform_4, window_bounds = array<i64: 1, 16, 128>}]} {
    %cst = arith.constant 0.000000e+00 : f32
    %0 = vector.broadcast %cst : f32 to vector<16x128xf32>
    %c0 = arith.constant 0 : index
    %c0_0 = arith.constant 0 : index
    %c0_1 = arith.constant 0 : index
    %1 = vector.load %arg1[%c0, %c0_0, %c0_1] : memref<1x20x160xf32, #tpu.memory_space<vmem>>, vector<1x16x160xf32>
    %2 = vector.shape_cast %1 : vector<1x16x160xf32> to vector<16x160xf32>
    %3 = arith.truncf %2 : vector<16x160xf32> to vector<16x160xbf16>
    %c0_2 = arith.constant 0 : index
    %c0_3 = arith.constant 0 : index
    %c0_4 = arith.constant 0 : index
    %4 = vector.load %arg2[%c0_2, %c0_3, %c0_4] : memref<3x160x128xbf16, #tpu.memory_space<vmem>>, vector<1x160x128xbf16>
    %5 = vector.shape_cast %4 : vector<1x160x128xbf16> to vector<160x128xbf16>
    %cst_5 = arith.constant dense<0.000000e+00> : vector<16x128xf32>
    %6 = tpu.matmul %3, %5, %cst_5 {dimension_numbers = #tpu.dot_dimension_numbers<[1], [0], [0], [1], [0, 0, 1, 1], [], []>} : vector<16x160xbf16>, vector<160x128xbf16>, vector<16x128xf32> -> vector<16x128xf32>
    %7 = arith.addf %0, %6 : vector<16x128xf32>
    %c0_6 = arith.constant 0 : index
    %c2 = arith.constant 2 : index
    %c0_7 = arith.constant 0 : index
    %8 = vector.load %arg1[%c0_6, %c2, %c0_7] : memref<1x20x160xf32, #tpu.memory_space<vmem>>, vector<1x16x160xf32>
    %9 = vector.shape_cast %8 : vector<1x16x160xf32> to vector<16x160xf32>
    %10 = arith.truncf %9 : vector<16x160xf32> to vector<16x160xbf16>
    %c1 = arith.constant 1 : index
    %c0_8 = arith.constant 0 : index
    %c0_9 = arith.constant 0 : index
    %11 = vector.load %arg2[%c1, %c0_8, %c0_9] : memref<3x160x128xbf16, #tpu.memory_space<vmem>>, vector<1x160x128xbf16>
    %12 = vector.shape_cast %11 : vector<1x160x128xbf16> to vector<160x128xbf16>
    %cst_10 = arith.constant dense<0.000000e+00> : vector<16x128xf32>
    %13 = tpu.matmul %10, %12, %cst_10 {dimension_numbers = #tpu.dot_dimension_numbers<[1], [0], [0], [1], [0, 0, 1, 1], [], []>} : vector<16x160xbf16>, vector<160x128xbf16>, vector<16x128xf32> -> vector<16x128xf32>
    %14 = arith.addf %7, %13 : vector<16x128xf32>
    %c0_11 = arith.constant 0 : index
    %c4 = arith.constant 4 : index
    %c0_12 = arith.constant 0 : index
    %15 = vector.load %arg1[%c0_11, %c4, %c0_12] : memref<1x20x160xf32, #tpu.memory_space<vmem>>, vector<1x16x160xf32>
    %16 = vector.shape_cast %15 : vector<1x16x160xf32> to vector<16x160xf32>
    %17 = arith.truncf %16 : vector<16x160xf32> to vector<16x160xbf16>
    %c2_13 = arith.constant 2 : index
    %c0_14 = arith.constant 0 : index
    %c0_15 = arith.constant 0 : index
    %18 = vector.load %arg2[%c2_13, %c0_14, %c0_15] : memref<3x160x128xbf16, #tpu.memory_space<vmem>>, vector<1x160x128xbf16>
    %19 = vector.shape_cast %18 : vector<1x160x128xbf16> to vector<160x128xbf16>
    %cst_16 = arith.constant dense<0.000000e+00> : vector<16x128xf32>
    %20 = tpu.matmul %17, %19, %cst_16 {dimension_numbers = #tpu.dot_dimension_numbers<[1], [0], [0], [1], [0, 0, 1, 1], [], []>} : vector<16x160xbf16>, vector<160x128xbf16>, vector<16x128xf32> -> vector<16x128xf32>
    %21 = arith.addf %14, %20 : vector<16x128xf32>
    %c0_17 = arith.constant 0 : index
    %c0_18 = arith.constant 0 : index
    %22 = vector.load %arg3[%c0_17, %c0_18] : memref<1x128xf32, #tpu.memory_space<vmem>>, vector<1x128xf32>
    %23 = vector.broadcast %22 : vector<1x128xf32> to vector<16x128xf32>
    %24 = arith.mulf %21, %23 : vector<16x128xf32>
    %c0_19 = arith.constant 0 : index
    %c0_20 = arith.constant 0 : index
    %25 = vector.load %arg4[%c0_19, %c0_20] : memref<1x128xf32, #tpu.memory_space<vmem>>, vector<1x128xf32>
    %26 = vector.broadcast %25 : vector<1x128xf32> to vector<16x128xf32>
    %27 = arith.addf %24, %26 : vector<16x128xf32>
    %cst_21 = arith.constant 0.000000e+00 : f32
    %28 = vector.broadcast %cst_21 : f32 to vector<16x128xf32>
    %29 = arith.cmpf ogt, %27, %28 : vector<16x128xf32>
    %cst_22 = arith.constant 2.000000e-01 : f32
    %30 = vector.broadcast %cst_22 : f32 to vector<16x128xf32>
    %31 = arith.mulf %30, %27 : vector<16x128xf32>
    %32 = arith.select %29, %27, %31 : vector<16x128xi1>, vector<16x128xf32>
    %33 = arith.truncf %32 : vector<16x128xf32> to vector<16x128xbf16>
    %c0_23 = arith.constant 0 : index
    %c0_24 = arith.constant 0 : index
    %c0_25 = arith.constant 0 : index
    %34 = vector.load %arg5[%c0_23, %c0_24, %c0_25] : memref<1x16x128xbf16, #tpu.memory_space<vmem>>, vector<1x16x128xbf16>
    %35 = vector.shape_cast %34 : vector<1x16x128xbf16> to vector<16x128xbf16>
    %36 = vector.shape_cast %33 : vector<16x128xbf16> to vector<1x16x128xbf16>
    tpu.vector_store %arg5[%c0_23, %c0_24, %c0_25], %36 {strides = array<i32>} : memref<1x16x128xbf16, #tpu.memory_space<vmem>>, vector<1x16x128xbf16>,
    return
  }
  func.func @transform_0(%arg0: i32) -> (i32, i32, i32) {
    %c0_i32 = arith.constant 0 : i32
    %c0_i32_0 = arith.constant 0 : i32
    %c0_i32_1 = arith.constant 0 : i32
    return %arg0, %c0_i32, %c0_i32_0 : i32, i32, i32
  }
  func.func @transform_1(%arg0: i32) -> (i32, i32, i32) {
    %c0_i32 = arith.constant 0 : i32
    %c0_i32_0 = arith.constant 0 : i32
    %c0_i32_1 = arith.constant 0 : i32
    %c0_i32_2 = arith.constant 0 : i32
    return %c0_i32, %c0_i32_0, %c0_i32_1 : i32, i32, i32
  }
  func.func @transform_2(%arg0: i32) -> (i32, i32) {
    %c0_i32 = arith.constant 0 : i32
    %c0_i32_0 = arith.constant 0 : i32
    %c0_i32_1 = arith.constant 0 : i32
    return %c0_i32, %c0_i32_0 : i32, i32
  }
  func.func @transform_3(%arg0: i32) -> (i32, i32) {
    %c0_i32 = arith.constant 0 : i32
    %c0_i32_0 = arith.constant 0 : i32
    %c0_i32_1 = arith.constant 0 : i32
    return %c0_i32, %c0_i32_0 : i32, i32
  }
  func.func @transform_4(%arg0: i32) -> (i32, i32, i32) {
    %c0_i32 = arith.constant 0 : i32
    %c0_i32_0 = arith.constant 0 : i32
    %c0_i32_1 = arith.constant 0 : i32
    return %arg0, %c0_i32, %c0_i32_0 : i32, i32, i32
  }
}

</mosaic_0001>

<bundles_post_ra>
// kernel: transformer_block.4
= control target key start
LH: loop header
LB: loop body
LE: loop exit
PB: predicated region body
PF: predicated region fallthrough
CT: control target
= control target key end

     0   :  { %s787_s12 = smov 0   ;;  %s901_s0 = inlined_call_operand.vmem [shape: f32[2,16,128], index: 0, kind: input, shape index: {}]   ;;  %s902_s1 = inlined_call_operand.vmem [shape: bf16[128,384], index: 1, kind: input, shape index: {}]   ;;  %s903_s2 = inlined_call_operand.vmem [shape: f32[1,384], index: 2, kind: input, shape index: {}]   ;;  %s904_s3 = inlined_call_operand.vmem [shape: bf16[2,16,128], index: 3, kind: output, shape index: {}]  }
   0x1 LB: > { %s613_s13 = sadd.s32 4294967295, %s762_s12   ;;  %p617_p0 = scmp.ge.s32.totalorder %s762_s12, 1  ;;  %s762_s12 = sphi %s787_s12, %s13_s12  }
   0x2   : > { %p137_p1 = scmp.lt.s32.totalorder %s762_s12, 3 }
   0x4   : > { %p138_p2 = pnand %p617_p0, %p137_p1 }
   0x5   : > { %v716_v0 = vld [vmem:[%s902_s1 + $0x4] ss:$12 sps:$4 sm:$0xff] (!%p138_p2)   ;;  %v718_v1 = vld [vmem:[%s902_s1] ss:$12 sps:$4 sm:$0xff] (!%p138_p2)   ;;  %v764_v2 = vmov (!%p138_p2), 0   ;;  %p161_p3 = scmp.lt.s32.totalorder (!%p138_p2), %s613_s13, 1  ;;  %v209_v21 = vlaneseq (!%p138_p2) }
   0x6   : > { %141 = sbr.rel (%p138_p2) target bundleno = 1013 (0x3f5), region = 32  ;;  %384 = vmatprep.mubr.bf16.mxu0 (!%p138_p2), %v764_v2  ;;  %352 = vmatprep.subr.bf16.mxu0 (!%p138_p2), %v716_v0  ;;  %v719_v3 = vld [vmem:[%s902_s1 + $0x1c] ss:$12 sps:$4 sm:$0xff] (!%p138_p2)   ;;  %v721_v4 = vld [vmem:[%s902_s1 + $0x18] ss:$12 sps:$4 sm:$0xff] (!%p138_p2)   ;;  %v765_v20 = vmov (!%p138_p2), 0.0  }
   0x7   : > { %353 = vmatpush1.bf16.msra.mxu0 (!%p138_p2), %v718_v1  ;;  %v722_v5 = vld [vmem:[%s902_s1 + $0x34] ss:$12 sps:$4 sm:$0xff] (!%p138_p2)   ;;  %v724_v6 = vld [vmem:[%s902_s1 + $0x30] ss:$12 sps:$4 sm:$0xff] (!%p138_p2)   ;;  %v725_v7 = vld [vmem:[%s902_s1 + $0x4c] ss:$12 sps:$4 sm:$0xff] (!%p138_p2)   ;;  %673 = vmatprep.subr.bf16.mxu1 (!%p138_p2), %v765_v20 }
   0x8   : > { %354 = vmatprep.subr.bf16.mxu0 (!%p138_p2), %v719_v3  ;;  %v727_v8 = vld [vmem:[%s902_s1 + $0x48] ss:$12 sps:$4 sm:$0xff] (!%p138_p2)   ;;  %v728_v9 = vld [vmem:[%s902_s1 + $0x64] ss:$12 sps:$4 sm:$0xff] (!%p138_p2)   ;;  %v730_v10 = vld [vmem:[%s902_s1 + $0x60] ss:$12 sps:$4 sm:$0xff] (!%p138_p2)  }
   0x9   : > { %v731_v11 = vld [vmem:[%s902_s1 + $0x7c] ss:$12 sps:$4 sm:$0xff] (!%p138_p2)   ;;  %v733_v12 = vld [vmem:[%s902_s1 + $0x78] ss:$12 sps:$4 sm:$0xff] (!%p138_p2)   ;;  %v734_v13 = vld [vmem:[%s902_s1 + $0x94] ss:$12 sps:$4 sm:$0xff] (!%p138_p2)  }
   0xa   : > { %v736_v14 = vld [vmem:[%s902_s1 + $0x90] ss:$12 sps:$4 sm:$0xff] (!%p138_p2)   ;;  %v737_v15 = vld [vmem:[%s902_s1 + $0xac] ss:$12 sps:$4 sm:$0xff] (!%p138_p2)   ;;  %v739_v16 = vld [vmem:[%s902_s1 + $0xa8] ss:$12 sps:$4 sm:$0xff] (!%p138_p2)  }
   0xb   : > { %355 = vmatpush1.bf16.msra.mxu0 (!%p138_p2), %v721_v4  ;;  %vm766_vm0 = vmmov (!%p138_p2), 0   ;;  %v851_v22 = vshrl.u32 (!%p138_p2), %v209_v21, 7  ;;  %v857_v24 = vld [vmem:[%s903_s2] sm:$0x7] (!%p138_p2)  ;;  %v740_v38 = vld [vmem:[%s902_s1 + $0x8] ss:$12 sps:$4 sm:$0xff] (!%p138_p2)  }
   0xc   : > { %356 = vmatprep.subr.bf16.mxu0 (!%p138_p2), %v722_v5  ;;  %689 = vmatprep.mubr.msk.bf16.mxu1 (!%p138_p2), %vm766_vm0, %v765_v20  ;;  %v741_v39 = vld [vmem:[%s902_s1 + $0x20] ss:$12 sps:$4 sm:$0xff] (!%p138_p2)   ;;  %v742_v40 = vld [vmem:[%s902_s1 + $0x38] ss:$12 sps:$4 sm:$0xff] (!%p138_p2)   ;;  %v743_v41 = vld [vmem:[%s902_s1 + $0x50] ss:$12 sps:$4 sm:$0xff] (!%p138_p2)  }
   0xd   : > { %s906_s13 = smov (!%p161_p3, %s613_s13), 1  ;;  %v211_v23 = vsub.s32 0, %v851_v22  ;;  %v215_v25 = vsub.s32 1, %v851_v22  ;;  %674 = vmatpush3.bf16.msra.mxu1 %v740_v38  ;;  %v744_v42 = vld [vmem:[%s902_s1 + $0x68] ss:$12 sps:$4 sm:$0xff]   ;;  %vm480_vm1 = vcmask 130048  }
   0xe   : > { %s651_s15 = sshll.u32 %s906_s13, 4  ;;  %675 = vmatprep.subr.bf16.mxu1 %v765_v20  ;;  %v745_v43 = vld [vmem:[%s902_s1 + $0x80] ss:$12 sps:$4 sm:$0xff]   ;;  %v746_v44 = vld [vmem:[%s902_s1 + $0x98] ss:$12 sps:$4 sm:$0xff]   ;;  %v219_v62 = vsub.s32 2, %v851_v22 }
   0xf   : > { %357 = vmatpush1.bf16.msra.mxu0 %v724_v6  ;;  %s165_s22 = scalar_lea.vmem %s901_s0, %s651_s15  ;;  %v212_v26 = vrot.slane %v857_v24, %v211_v23  ;;  %v216_v28 = vrot.slane %v857_v24, %v215_v25  ;;  %v747_v45 = vld [vmem:[%s902_s1 + $0xb0] ss:$12 sps:$4 sm:$0xff]   ;;  %s652_s18 = sshll.u32 %s906_s13, 3 }
  0x10   : > { %358 = vmatprep.subr.bf16.mxu0 %v725_v7  ;;  %v172_v17 = vld [vmem:[%s165_s22] sm:$0xff]  ;;  %v173_v18 = vld [vmem:[%s165_s22 + $0x8] sm:$0xff]  ;;  %v220_v1 = vrot.slane %v857_v24, %v219_v62  ;;  %s170_s21 = scalar_lea.vmem %s904_s3, %s652_s18 }
  0x11   : > { %v174_v19 = vpack.c.bf16 %v173_v18, %v172_v17  ;;  %676 = vmatpush3.bf16.msra.mxu1 %v741_v39 }
  0x12   : > { %677 = vmatprep.subr.bf16.mxu1 %v765_v20 }
  0x13   : > { %359 = vmatpush1.bf16.msra.mxu0 %v727_v8 }
  0x14   : > { %360 = vmatprep.subr.bf16.mxu0 %v728_v9 }
  0x15   : > { %678 = vmatpush3.bf16.msra.mxu1 %v742_v40 }
  0x16   : > { %679 = vmatprep.subr.bf16.mxu1 %v765_v20 }
  0x17   : > { %361 = vmatpush1.bf16.msra.mxu0 %v730_v10 }
  0x18   : > { %362 = vmatprep.subr.bf16.mxu0 %v731_v11 }
  0x19   : > { %680 = vmatpush3.bf16.msra.mxu1 %v743_v41 }
  0x1a   : > { %681 = vmatprep.subr.bf16.mxu1 %v765_v20 }
  0x1b   : > { %363 = vmatpush1.bf16.msra.mxu0 %v733_v12 }
  0x1c   : > { %364 = vmatprep.subr.bf16.mxu0 %v734_v13 }
  0x1d   : > { %682 = vmatpush3.bf16.msra.mxu1 %v744_v42 }
  0x1e   : > { %683 = vmatprep.subr.bf16.mxu1 %v765_v20 }
  0x1f   : > { %365 = vmatpush1.bf16.msra.mxu0 %v736_v14 }
  0x20   : > { %366 = vmatprep.subr.bf16.mxu0 %v737_v15 }
  0x21   : > { %684 = vmatpush3.bf16.msra.mxu1 %v745_v43 }
  0x22   : > { %685 = vmatprep.subr.bf16.mxu1 %v765_v20 }
  0x23   : > { %367 = vmatpush1.bf16.msra.mxu0 %v739_v16 }
  0x24   : > { %693 = vmatprep.subr.bf16.mxu0 %v765_v20 }
  0x25   : > { %686 = vmatpush3.bf16.msra.mxu1 %v746_v44 }
  0x26   : > { %385 = vmatmul.mubr.bf16.vlgmr.msra.gmra.mrb[0].mxu0 %v174_v19  ;;  %687 = vmatprep.subr.bf16.mxu1 %v765_v20 }
  0x27   : > { %695 = vmatprep.mubr.msk.bf16.mxu0 %vm766_vm0, %v765_v20 }
  0x29   : > { %688 = vmatpush3.bf16.msra.mxu1 %v747_v45 }
  0x2a   : > { %699 = vmatprep.subr.bf16.mxu1 %v765_v20 }
  0x2c   : > { %690 = vmatmul.mubr.bf16.vlgmr.msra.gmra.mrb[0].mxu1 %v174_v19 }
  0x2d   : > { %701 = vmatprep.mubr.msk.bf16.mxu1 %vm766_vm0, %v765_v20 }
  0xf9   : > { %v386_v27 = vpop.f32.mrb[0].mxu0 }
  0xfa   : > { %v388_v29 = vpop.f32.mrb[1].mxu0  ;;  %v387_v31 = vadd.f32 %v386_v27, %v212_v26 }
  0xfb   : > { %v390_v30 = vpop.f32.mrb[2].mxu0  ;;  %v389_v34 = vadd.f32 %v388_v29, %v216_v28 }
  0xfc   : > { %v391_v32 = vadd.f32 %v390_v30, %v212_v26  ;;  %v392_v33 = vpop.f32.mrb[3].mxu0 }
  0xfd   : > { %v393_v35 = vadd.f32 %v392_v33, %v216_v28 }
  0xfe   : > { %v436_v36 = vpack.c.bf16 %v391_v32, %v387_v31 }
  0xff   : > { %v437_v37 = vpack.c.bf16 %v393_v35, %v389_v34  ;;  %v429_v63 = vpop.f32.mrb[0].mxu1 }
 0x100   : > { %v691_v0 = vpop.f32.mrb[1].mxu1  ;;  %v430_v4 = vadd.f32 %v429_v63, %v220_v1 }
 0x101   : > { %694 = vmatpush3.bf16.xpose.msra.mxu0 %v437_v37  ;;  %v432_v2 = vpop.f32.mrb[2].mxu1 }
 0x102   : > { %v692_v3 = vpop.f32.mrb[3].mxu1  ;;  %v433_v5 = vadd.f32 %v432_v2, %v220_v1 }
 0x104   : > { %v438_v6 = vpack.c.bf16 %v433_v5, %v430_v4 }
 0x106   : > { %700 = vmatpush3.bf16.msra.mxu1 %v438_v6 }
 0x108   : > { %696 = vmatmul.mubr.bf16.vlgmr.msra.gmra.mrb[4].mxu0 %v436_v36 }
 0x1db   : > { %v473_v46 = vpop.f32.mrb[4].mxu0 }
 0x1dc   : > { %v697_v47 = vpop.f32.mrb[5].mxu0  ;;  %v481_v48 = vsel %vm480_vm1, %v473_v46, -inf }
 0x1dd   : > { %482 = vmax.xlane.f32.xlu0 %v481_v48  ;;  %v476_v49 = vpop.f32.mrb[6].mxu0 }
 0x1de   : > { %v698_v50 = vpop.f32.mrb[7].mxu0  ;;  %v484_v51 = vsel %vm480_vm1, %v476_v49, -inf }
 0x1e1   : > { %485 = vmax.xlane.f32.xlu0 %v484_v51 }
 0x26a   : > { %v483_v52 = vpop.xlane.xlu0 %482 }
 0x26b   : > { %v487_v53 = vsub.f32 %v473_v46, %v483_v52 }
 0x26d   : > { %v489_v54 = vmul.f32 1.442695, %v487_v53 }
 0x26e   : > { %v486_v55 = vpop.xlane.xlu0 %485 }
 0x26f   : > { %748 = vpow2.f32 %v489_v54  ;;  %v488_v56 = vsub.f32 %v476_v49, %v486_v55 }
 0x271   : > { %v491_v57 = vmul.f32 1.442695, %v488_v56 }
 0x273   : > { %750 = vpow2.f32 %v491_v57 }
 0x279   : > { %v749_v58 = vpop.eup %748 }
 0x27a   : > { %v493_v59 = vsel %vm480_vm1, %v749_v58, 0.0 }
 0x27b   : > { %494 = vadd.xlane.f32.xlu1 %v493_v59 }
 0x27d   : > { %v751_v60 = vpop.eup %750 }
 0x27e   : > { %v496_v61 = vsel %vm480_vm1, %v751_v60, 0.0 }
 0x27f   : > { %497 = vadd.xlane.f32.xlu1 %v496_v61 }
 0x308   : > { %v495_v7 = vpop.xlane.xlu1 %494 }
 0x309   : > { %752 = vrcp.f32 %v495_v7 }
 0x30c   : > { %v498_v8 = vpop.xlane.xlu1 %497 }
 0x30d   : > { %754 = vrcp.f32 %v498_v8 }
 0x313   : > { %v753_v9 = vpop.eup %752 }
 0x314   : > { %v500_v11 = vmul.f32 %v753_v9, %v749_v58 }
 0x317   : > { %v755_v10 = vpop.eup %754 }
 0x318   : > { %v502_v12 = vmul.f32 %v755_v10, %v751_v60 }
 0x31a   : > { %v503_v13 = vpack.c.bf16 %v502_v12, %v500_v11 }
 0x31c   : > { %702 = vmatmul.mubr.msk.bf16.vlgmr.msra.gmra.mrb[4].mxu1 %vm480_vm1, %v503_v13 }
 0x3ef   : > { %v541_v14 = vpop.f32.mrb[4].mxu1 }
 0x3f0   : > { %v703_v15 = vpop.f32.mrb[5].mxu1 }
 0x3f1   : > { %v544_v16 = vpop.f32.mrb[6].mxu1 }
 0x3f2   : > { %v658_v17 = vpack.c.bf16 %v544_v16, %v541_v14  ;;  %v704_v18 = vpop.f32.mrb[7].mxu1 }
 0x3f4   : > { %659 = vst [vmem:[%s170_s21] sm:$0xff] %v658_v17  }
 0x3f5 PF: > { %s13_s12 = sadd.s32 1, %s762_s12  }
 0x3f6   : > { %p10_p4 = scmp.ge.s32.totalorder %s13_s12, 4  }
 0x3f8   :  { %12 = sbr.rel (!%p10_p4) target bundleno = 1 (0x1), region = 62 }

// kernel: transformer_block.5
= control target key start
LH: loop header
LB: loop body
LE: loop exit
PB: predicated region body
PF: predicated region fallthrough
CT: control target
= control target key end

     0   :  { %s928_s18 = smov 0   ;;  %s1089_s0 = inlined_call_operand.vmem [shape: bf16[2,18,144], index: 0, kind: input, shape index: {}]   ;;  %s1090_s1 = inlined_call_operand.vmem [shape: bf16[3,144,128], index: 1, kind: input, shape index: {}]   ;;  %s1091_s2 = inlined_call_operand.vmem [shape: f32[1,128], index: 2, kind: input, shape index: {}]   ;;  %s1092_s3 = inlined_call_operand.vmem [shape: f32[1,128], index: 3, kind: input, shape index: {}]   ;;  %s1093_s4 = inlined_call_operand.vmem [shape: f32[2,16,128], index: 4, kind: input, shape index: {}]   ;;  %s1094_s5 = inlined_call_operand.vmem [shape: f32[2,16,128], index: 5, kind: output, shape index: {}]  }
   0x1 LB: > { %s752_s19 = sadd.s32 4294967295, %s895_s18   ;;  %p756_p0 = scmp.ge.s32.totalorder %s895_s18, 1  ;;  %s895_s18 = sphi %s928_s18, %s15_s18  }
   0x2   : > { %p197_p1 = scmp.lt.s32.totalorder %s895_s18, 3 }
   0x4   : > { %p198_p2 = pnand %p756_p0, %p197_p1 }
   0x5   : > { %v856_v0 = vld [vmem:[%s1090_s1] sm:$0xff] (!%p198_p2)   ;;  %v897_v1 = vmov (!%p198_p2), 0   ;;  %p230_p3 = scmp.lt.s32.totalorder (!%p198_p2), %s752_s19, 1  ;;  %v857_v2 = vld [vmem:[%s1090_s1 + $0x8] sm:$0xff] (!%p198_p2)   ;;  %v858_v3 = vld [vmem:[%s1090_s1 + $0x10] sm:$0xff] (!%p198_p2)   ;;  %vm379_vm0 = vcmask (!%p198_p2), 130048  }
   0x6   : > { %201 = sbr.rel (%p198_p2) target bundleno = 304 (0x130), region = 40  ;;  %481 = vmatprep.subr.bf16.mxu0 (!%p198_p2), %v897_v1  ;;  %383 = vmatprep.subr.bf16.mxu1 (!%p198_p2), %v897_v1  ;;  %v859_v4 = vld [vmem:[%s1090_s1 + $0x18] sm:$0xff] (!%p198_p2)   ;;  %v865_v5 = vld [vmem:[%s1090_s1 + $0x48] sm:$0xff] (!%p198_p2)   ;;  %v869_v9 = vld [vmem:[%s1090_s1 + $0x50] sm:$0xff] (!%p198_p2)   ;;  %vm299_vm1 = vsmask.f32 (!%p198_p2), 7424 }
   0x7   : > { %482 = vmatpush1.bf16.msra.mxu0 (!%p198_p2), %v856_v0  ;;  %384 = vmatpush1.bf16.msra.mxu1 (!%p198_p2), %v865_v5  ;;  %v860_v10 = vld [vmem:[%s1090_s1 + $0x20] sm:$0xff] (!%p198_p2)   ;;  %v871_v11 = vld [vmem:[%s1090_s1 + $0x58] sm:$0xff] (!%p198_p2)   ;;  %v861_v12 = vld [vmem:[%s1090_s1 + $0x28] sm:$0xff] (!%p198_p2)   ;;  %vm547_vm2 = vcmask (!%p198_p2), 1046528  }
   0x8   : > { %483 = vmatprep.subr.bf16.mxu0 (!%p198_p2), %v897_v1  ;;  %385 = vmatprep.subr.bf16.mxu1 (!%p198_p2), %v897_v1  ;;  %v873_v13 = vld [vmem:[%s1090_s1 + $0x60] sm:$0xff] (!%p198_p2)   ;;  %v862_v15 = vld [vmem:[%s1090_s1 + $0x30] sm:$0xff] (!%p198_p2)   ;;  %v875_v16 = vld [vmem:[%s1090_s1 + $0x68] sm:$0xff] (!%p198_p2)  }
   0x9   : > { %v863_v19 = vld [vmem:[%s1090_s1 + $0x38] sm:$0xff] (!%p198_p2)   ;;  %v877_v21 = vld [vmem:[%s1090_s1 + $0x70] sm:$0xff] (!%p198_p2)   ;;  %v864_v28 = vld [vmem:[%s1090_s1 + $0x40] sm:$0xff] (!%p198_p2)  }
   0xa   : > { %v879_v30 = vld [vmem:[%s1090_s1 + $0x78] sm:$0xff] (!%p198_p2)   ;;  %v868_v36 = vld [vmem:[%s1090_s1 + $0x90] sm:$0xff] (!%p198_p2)   ;;  %v881_v37 = vld [vmem:[%s1090_s1 + $0x80] sm:$0xff] (!%p198_p2)  }
   0xb   : > { %484 = vmatpush1.bf16.msra.mxu0 (!%p198_p2), %v857_v2  ;;  %386 = vmatpush1.bf16.msra.mxu1 (!%p198_p2), %v869_v9  ;;  %v870_v42 = vld [vmem:[%s1090_s1 + $0x98] sm:$0xff] (!%p198_p2)   ;;  %v883_v43 = vld [vmem:[%s1090_s1 + $0x88] sm:$0xff] (!%p198_p2)   ;;  %v872_v46 = vld [vmem:[%s1090_s1 + $0xa0] sm:$0xff] (!%p198_p2)  }
   0xc   : > { %485 = vmatprep.subr.bf16.mxu0 (!%p198_p2), %v897_v1  ;;  %387 = vmatprep.subr.bf16.mxu1 (!%p198_p2), %v897_v1  ;;  %v874_v48 = vld [vmem:[%s1090_s1 + $0xa8] sm:$0xff] (!%p198_p2)   ;;  %v876_v49 = vld [vmem:[%s1090_s1 + $0xb0] sm:$0xff] (!%p198_p2)   ;;  %v878_v50 = vld [vmem:[%s1090_s1 + $0xb8] sm:$0xff] (!%p198_p2)  }
   0xd   : > { %s1096_s19 = smov (!%p230_p3, %s752_s19), 1  ;;  %v880_v51 = vld [vmem:[%s1090_s1 + $0xc0] sm:$0xff]   ;;  %v882_v52 = vld [vmem:[%s1090_s1 + $0xc8] sm:$0xff]   ;;  %v886_v54 = vld [vmem:[%s1090_s1 + $0xd0] sm:$0xff]  }
   0xe   : > { %s846_s24 = smul.u32 24, %s1096_s19  ;;  %v834_v63 = vld [vmem:[%s1091_s2] ss:$0 sm:$0xff]  ;;  %s838_s9 = sshll.u32 %s1096_s19, 4 }
   0xf   : > { %486 = vmatpush1.bf16.msra.mxu0 %v858_v3  ;;  %388 = vmatpush1.bf16.msra.mxu1 %v871_v11  ;;  %s239_s14 = scalar_lea.vmem %s1093_s4, %s838_s9  ;;  %s244_s16 = scalar_lea.vmem %s1094_s5, %s838_s9 }
  0x10   : > { %s955_s29 = scalar_lea.vmem %s1089_s0, %s846_s24  ;;  %487 = vmatprep.subr.bf16.mxu0 %v897_v1  ;;  %389 = vmatprep.subr.bf16.mxu1 %v897_v1 }
  0x11   : > { %v246_v6 = vld [vmem:[%s955_s29] sm:$0xff]  ;;  %v965_v7 = vld [vmem:[%s955_s29 + $0x8] sm:$0xff]  ;;  %v266_v20 = vld [vmem:[%s955_s29 + $0x10] sm:$0x11] }
  0x12   : > { %v781_v8 = vcombine.high %v246_v6, %v965_v7  ;;  %v783_v22 = vcombine.high %v266_v20, %v266_v20  ;;  %v780_v23 = vcombine.low %v246_v6, %v965_v7  ;;  %v1009_v24 = vld [vmem:[%s955_s29] sm:$0xee]  ;;  %v782_v32 = vcombine.low %v266_v20, %v266_v20 }
  0x13   : > { %488 = vmatpush1.bf16.msra.mxu0 %v859_v4  ;;  %390 = vmatpush1.bf16.msra.mxu1 %v873_v13  ;;  %v823_v27 = vcombine.high %v1009_v24, %v965_v7  ;;  %v822_v53 = vcombine.low %v1009_v24, %v965_v7 }
  0x14   : > { %803 = vmatprep.mubr.msk.bf16.mxu0 %vm379_vm0, %v781_v8  ;;  %489 = vmatprep.subr.bf16.mxu0 %v897_v1  ;;  %v315_v14 = vshll.u32 %v781_v8, 16  ;;  %v313_v17 = vshrl.u32 %v781_v8, 16  ;;  %v320_v26 = vshll.u32 %v783_v22, 16  ;;  %v303_v29 = vshll.u32 %v780_v23, 16 }
  0x15   : > { %391 = vmatprep.subr.bf16.mxu1 %v897_v1  ;;  %v551_v33 = vrot.slane %v823_v27, 1  ;;  %v552_v34 = vrot.slane %v783_v22, 1  ;;  %v301_v38 = vshrl.u32 %v780_v23, 16  ;;  %v308_v40 = vshll.u32 %v782_v32, 16 }
  0x16   : > { %v317_v18 = vrot.slane %v315_v14, 1  ;;  %v322_v31 = vrot.slane %v320_v26, 1  ;;  %v305_v39 = vrot.slane %v303_v29, 1  ;;  %v548_v55 = vrot.slane %v822_v53, 1  ;;  %v680_v14 = vld [vmem:[%s239_s14 + $0x8] sm:$0xff] }
  0x17   : > { %490 = vmatpush1.bf16.msra.mxu0 %v860_v10  ;;  %392 = vmatpush1.bf16.msra.mxu1 %v875_v16  ;;  %v553_v41 = vsel %vm547_vm2, %v551_v33, %v552_v34  ;;  %v310_v45 = vrot.slane %v308_v40, 1  ;;  %v549_v56 = vrot.slane %v782_v32, 1  ;;  %v679_v10 = vld [vmem:[%s239_s14] sm:$0xff] }
  0x18   : > { %491 = vmatprep.subr.bf16.mxu0 %v897_v1  ;;  %393 = vmatprep.subr.bf16.mxu1 %v897_v1  ;;  %v318_v25 = vor.u32 %v317_v18, %v313_v17  ;;  %v306_v44 = vor.u32 %v305_v39, %v301_v38 }
  0x19   : > { %v550_v57 = vsel %vm547_vm2, %v548_v55, %v549_v56 }
  0x1a   : > { %v323_v35 = vsel %vm299_vm1, %v318_v25, %v322_v31  ;;  %v311_v47 = vsel %vm299_vm1, %v306_v44, %v310_v45 }
  0x1b   : > { %492 = vmatpush1.bf16.msra.mxu0 %v861_v12  ;;  %394 = vmatpush1.bf16.msra.mxu1 %v877_v21 }
  0x1c   : > { %493 = vmatprep.subr.bf16.mxu0 %v897_v1  ;;  %395 = vmatprep.subr.bf16.mxu1 %v897_v1 }
  0x1d   : > { %793 = vmatprep.mubr.msk.bf16.mxu1 %vm379_vm0, %v323_v35 }
  0x1f   : > { %494 = vmatpush1.bf16.msra.mxu0 %v862_v15  ;;  %396 = vmatpush1.bf16.msra.mxu1 %v879_v30 }
  0x20   : > { %495 = vmatprep.subr.bf16.mxu0 %v897_v1  ;;  %397 = vmatprep.subr.bf16.mxu1 %v897_v1 }
  0x23   : > { %496 = vmatpush1.bf16.msra.mxu0 %v863_v19  ;;  %398 = vmatpush1.bf16.msra.mxu1 %v881_v37 }
  0x24   : > { %497 = vmatprep.subr.bf16.mxu0 %v897_v1  ;;  %399 = vmatprep.subr.bf16.mxu1 %v897_v1 }
  0x27   : > { %498 = vmatpush1.bf16.msra.mxu0 %v864_v28  ;;  %400 = vmatpush1.bf16.msra.mxu1 %v883_v43 }
  0x28   : > { %612 = vmatprep.subr.bf16.mxu0 %v897_v1 }
  0x2a   : > { %514 = vmatmul.mubr.bf16.vlgmr.msra.gmra.mrb[0].mxu0 %v780_v23  ;;  %416 = vmatmul.mubr.bf16.vlgmr.msra.gmra.mrb[0].mxu1 %v311_v47 }
  0x2b   : > { %613 = vmatpush1.bf16.msra.mxu0 %v868_v36  ;;  %833 = vmatprep.mubr.msk.bf16.mxu0 %vm379_vm0, %v553_v41 }
  0x2c   : > { %614 = vmatprep.subr.bf16.mxu0 %v897_v1 }
  0x2f   : > { %615 = vmatpush1.bf16.msra.mxu0 %v870_v42 }
  0x30   : > { %616 = vmatprep.subr.bf16.mxu0 %v897_v1 }
  0x33   : > { %617 = vmatpush1.bf16.msra.mxu0 %v872_v46 }
  0x34   : > { %618 = vmatprep.subr.bf16.mxu0 %v897_v1 }
  0x37   : > { %619 = vmatpush1.bf16.msra.mxu0 %v874_v48 }
  0x38   : > { %620 = vmatprep.subr.bf16.mxu0 %v897_v1 }
  0x3b   : > { %621 = vmatpush1.bf16.msra.mxu0 %v876_v49 }
  0x3c   : > { %622 = vmatprep.subr.bf16.mxu0 %v897_v1 }
  0x3f   : > { %623 = vmatpush1.bf16.msra.mxu0 %v878_v50 }
  0x40   : > { %624 = vmatprep.subr.bf16.mxu0 %v897_v1 }
  0x43   : > { %625 = vmatpush1.bf16.msra.mxu0 %v880_v51 }
  0x44   : > { %626 = vmatprep.subr.bf16.mxu0 %v897_v1 }
  0x47   : > { %627 = vmatpush1.bf16.msra.mxu0 %v882_v52 }
  0x48   : > { %628 = vmatprep.subr.bf16.mxu0 %v897_v1  ;;  %v835_v1 = vld [vmem:[%s1092_s3] ss:$0 sm:$0xff] }
  0x4b   : > { %629 = vmatpush1.bf16.msra.mxu0 %v886_v54 }
  0x4e   : > { %645 = vmatmul.mubr.bf16.vlgmr.msra.gmra.mrb[0].mxu0 %v550_v57 }
  0xfd   : > { %v417_v58 = vpop.f32.mrb[0].mxu1 }
  0xfe   : > { %v419_v59 = vpop.f32.mrb[1].mxu1 }
  0xff   : > { %v420_v60 = vpop.f32.mrb[2].mxu1 }
 0x100   : > { %v422_v61 = vpop.f32.mrb[3].mxu1 }
 0x121   : > { %v646_v62 = vpop.f32.mrb[0].mxu0 }
 0x122   : > { %v840_v0 = vadd.f32 %v646_v62, %v417_v58  ;;  %v648_v2 = vpop.f32.mrb[1].mxu0 }
 0x123   : > { %v649_v3 = vpop.f32.mrb[2].mxu0 }
 0x124   : > { %v662_v4 = vmul.f32 %v840_v0, %v834_v63  ;;  %v841_v5 = vadd.f32 %v649_v3, %v420_v60  ;;  %v651_v6 = vpop.f32.mrb[3].mxu0 }
 0x126   : > { %v671_v7 = vadd.f32 %v835_v1, %v662_v4  ;;  %v663_v8 = vmul.f32 %v841_v5, %v834_v63 }
 0x128   : > { %vm673_vm3 = vcmp.gt.f32.partialorder %v671_v7, 0.0  ;;  %v675_v9 = vmul.f32 0.2, %v671_v7  ;;  %v672_v11 = vadd.f32 %v835_v1, %v663_v8 }
 0x12a   : > { %v677_v12 = vsel %vm673_vm3, %v671_v7, %v675_v9  ;;  %vm674_vm4 = vcmp.gt.f32.partialorder %v672_v11, 0.0  ;;  %v676_v13 = vmul.f32 0.2, %v672_v11 }
 0x12b   : > { %v681_v15 = vadd.f32 %v679_v10, %v677_v12 }
 0x12c   : > { %v678_v16 = vsel %vm674_vm4, %v672_v11, %v676_v13 }
 0x12d   : > { %683 = vst [vmem:[%s244_s16] sm:$0xff] %v681_v15  ;;  %v682_v17 = vadd.f32 %v680_v14, %v678_v16 }
 0x12f   : > { %684 = vst [vmem:[%s244_s16 + $0x8] sm:$0xff] %v682_v17 }
 0x130 PF: > { %s15_s18 = sadd.s32 1, %s895_s18  }
 0x131   : > { %p12_p4 = scmp.ge.s32.totalorder %s15_s18, 4  }
 0x133   :  { %14 = sbr.rel (!%p12_p4) target bundleno = 1 (0x1), region = 75 }

// kernel: transformer_block.6
= control target key start
LH: loop header
LB: loop body
LE: loop exit
PB: predicated region body
PF: predicated region fallthrough
CT: control target
= control target key end

     0   :  { %s886_s15 = smov 0   ;;  %s1059_s0 = inlined_call_operand.vmem [shape: f32[2,20,160], index: 0, kind: input, shape index: {}]   ;;  %s1060_s1 = inlined_call_operand.vmem [shape: bf16[3,160,128], index: 1, kind: input, shape index: {}]   ;;  %s1061_s2 = inlined_call_operand.vmem [shape: f32[1,128], index: 2, kind: input, shape index: {}]   ;;  %s1062_s3 = inlined_call_operand.vmem [shape: f32[1,128], index: 3, kind: input, shape index: {}]   ;;  %s1063_s4 = inlined_call_operand.vmem [shape: bf16[2,16,128], index: 4, kind: output, shape index: {}]  }
   0x1 LB: > { %s711_s16 = sadd.s32 4294967295, %s858_s15   ;;  %p715_p0 = scmp.ge.s32.totalorder %s858_s15, 1  ;;  %s858_s15 = sphi %s886_s15, %s14_s15  }
   0x2   : > { %p162_p1 = scmp.lt.s32.totalorder %s858_s15, 3 }
   0x4   : > { %p163_p2 = pnand %p715_p0, %p162_p1 }
   0x5   : > { %v822_v0 = vld [vmem:[%s1060_s1] sm:$0xff] (!%p163_p2)   ;;  %v860_v1 = vmov (!%p163_p2), 0   ;;  %p188_p3 = scmp.lt.s32.totalorder (!%p163_p2), %s711_s16, 1  ;;  %v823_v2 = vld [vmem:[%s1060_s1 + $0x8] sm:$0xff] (!%p163_p2)   ;;  %v824_v3 = vld [vmem:[%s1060_s1 + $0x10] sm:$0xff] (!%p163_p2)   ;;  %vm326_vm0 = vcmask (!%p163_p2), 261120  }
   0x6   : > { %166 = sbr.rel (%p163_p2) target bundleno = 312 (0x138), region = 36  ;;  %434 = vmatprep.subr.bf16.mxu0 (!%p163_p2), %v860_v1  ;;  %330 = vmatprep.subr.bf16.mxu1 (!%p163_p2), %v860_v1  ;;  %v825_v4 = vld [vmem:[%s1060_s1 + $0x18] sm:$0xff] (!%p163_p2)   ;;  %v832_v5 = vld [vmem:[%s1060_s1 + $0x50] sm:$0xff] (!%p163_p2)   ;;  %v826_v9 = vld [vmem:[%s1060_s1 + $0x20] sm:$0xff] (!%p163_p2)   ;;  %vm258_vm1 = vcmask (!%p163_p2), 1046528   ;;  %vm508_vm2 = vcmask (!%p163_p2), 1045504  }
   0x7   : > { %435 = vmatpush1.bf16.msra.mxu0 (!%p163_p2), %v822_v0  ;;  %331 = vmatpush1.bf16.msra.mxu1 (!%p163_p2), %v832_v5  ;;  %v834_v10 = vld [vmem:[%s1060_s1 + $0x58] sm:$0xff] (!%p163_p2)   ;;  %v836_v11 = vld [vmem:[%s1060_s1 + $0x60] sm:$0xff] (!%p163_p2)   ;;  %v827_v12 = vld [vmem:[%s1060_s1 + $0x28] sm:$0xff] (!%p163_p2)  }
   0x8   : > { %436 = vmatprep.subr.bf16.mxu0 (!%p163_p2), %v860_v1  ;;  %332 = vmatprep.subr.bf16.mxu1 (!%p163_p2), %v860_v1  ;;  %v838_v13 = vld [vmem:[%s1060_s1 + $0x68] sm:$0xff] (!%p163_p2)   ;;  %v828_v14 = vld [vmem:[%s1060_s1 + $0x30] sm:$0xff] (!%p163_p2)   ;;  %v829_v16 = vld [vmem:[%s1060_s1 + $0x38] sm:$0xff] (!%p163_p2)  }
   0x9   : > { %v840_v15 = vld [vmem:[%s1060_s1 + $0x70] sm:$0xff] (!%p163_p2)   ;;  %v842_v18 = vld [vmem:[%s1060_s1 + $0x78] sm:$0xff] (!%p163_p2)   ;;  %v830_v19 = vld [vmem:[%s1060_s1 + $0x40] sm:$0xff] (!%p163_p2)  }
   0xa   : > { %v844_v24 = vld [vmem:[%s1060_s1 + $0x80] sm:$0xff] (!%p163_p2)   ;;  %v831_v28 = vld [vmem:[%s1060_s1 + $0x48] sm:$0xff] (!%p163_p2)   ;;  %v848_v42 = vld [vmem:[%s1060_s1 + $0x90] sm:$0xff] (!%p163_p2)  }
   0xb   : > { %437 = vmatpush1.bf16.msra.mxu0 (!%p163_p2), %v823_v2  ;;  %333 = vmatpush1.bf16.msra.mxu1 (!%p163_p2), %v834_v10  ;;  %v846_v34 = vld [vmem:[%s1060_s1 + $0x88] sm:$0xff] (!%p163_p2)   ;;  %v833_v40 = vld [vmem:[%s1060_s1 + $0xa0] sm:$0xff] (!%p163_p2)   ;;  %v850_v46 = vld [vmem:[%s1060_s1 + $0x98] sm:$0xff] (!%p163_p2)  }
   0xc   : > { %438 = vmatprep.subr.bf16.mxu0 (!%p163_p2), %v860_v1  ;;  %334 = vmatprep.subr.bf16.mxu1 (!%p163_p2), %v860_v1  ;;  %v835_v45 = vld [vmem:[%s1060_s1 + $0xa8] sm:$0xff] (!%p163_p2)   ;;  %v837_v49 = vld [vmem:[%s1060_s1 + $0xb0] sm:$0xff] (!%p163_p2)   ;;  %v839_v51 = vld [vmem:[%s1060_s1 + $0xb8] sm:$0xff] (!%p163_p2)  }
   0xd   : > { %s1065_s16 = smov (!%p188_p3, %s711_s16), 1  ;;  %v841_v52 = vld [vmem:[%s1060_s1 + $0xc0] sm:$0xff]   ;;  %v843_v53 = vld [vmem:[%s1060_s1 + $0xc8] sm:$0xff]   ;;  %v845_v54 = vld [vmem:[%s1060_s1 + $0xd0] sm:$0xff]  }
   0xe   : > { %s812_s21 = smul.u32 48, %s1065_s16  ;;  %v847_v55 = vld [vmem:[%s1060_s1 + $0xd8] sm:$0xff]   ;;  %v849_v58 = vld [vmem:[%s1060_s1 + $0xe0] sm:$0xff]   ;;  %v851_v61 = vld [vmem:[%s1060_s1 + $0xe8] sm:$0xff]   ;;  %s798_s12 = sshll.u32 %s1065_s16, 3 }
   0xf   : > { %439 = vmatpush1.bf16.msra.mxu0 %v824_v3  ;;  %335 = vmatpush1.bf16.msra.mxu1 %v836_v11  ;;  %s197_s17 = scalar_lea.vmem %s1063_s4, %s798_s12 }
  0x10   : > { %s913_s26 = scalar_lea.vmem %s1059_s0, %s812_s21  ;;  %440 = vmatprep.subr.bf16.mxu0 %v860_v1  ;;  %336 = vmatprep.subr.bf16.mxu1 %v860_v1 }
  0x11   : > { %v200_v6 = vld [vmem:[%s913_s26 + $0x8] sm:$0xff]  ;;  %v202_v7 = vld [vmem:[%s913_s26 + $0x18] sm:$0xff]  ;;  %v199_v29 = vld [vmem:[%s913_s26] sm:$0xff] }
  0x12   : > { %v204_v8 = vpack.c.bf16 %v202_v7, %v200_v6  ;;  %v476_v17 = vld [vmem:[%s913_s26 + $0x8] sm:$0xf0]  ;;  %v228_v22 = vld [vmem:[%s913_s26 + $0x28] sm:$0x3]  ;;  %v978_v30 = vld [vmem:[%s913_s26 + $0x10] sm:$0xff] }
  0x13   : > { %441 = vmatpush1.bf16.msra.mxu0 %v825_v4  ;;  %337 = vmatpush1.bf16.msra.mxu1 %v838_v13  ;;  %v226_v20 = vld [vmem:[%s913_s26 + $0x8] sm:$0xfc]  ;;  %v480_v21 = vpack.c.bf16 %v202_v7, %v476_v17  ;;  %v232_v25 = vpack.c.bf16 %v228_v22, %v228_v22  ;;  %v203_v37 = vpack.c.bf16 %v978_v30, %v199_v29  ;;  %v225_v38 = vld [vmem:[%s913_s26] sm:$0xfc]  ;;  %v227_v39 = vld [vmem:[%s913_s26 + $0x20] sm:$0x3] }
  0x14   : > { %760 = vmatprep.mubr.msk.bf16.mxu0 %vm326_vm0, %v204_v8  ;;  %442 = vmatprep.subr.bf16.mxu0 %v860_v1  ;;  %v230_v23 = vpack.c.bf16 %v202_v7, %v226_v20  ;;  %v478_v27 = vld [vmem:[%s913_s26 + $0x28] sm:$0xf]  ;;  %v229_v43 = vpack.c.bf16 %v978_v30, %v225_v38  ;;  %v231_v44 = vpack.c.bf16 %v227_v39, %v227_v39  ;;  %v475_v56 = vld [vmem:[%s913_s26] sm:$0xf0]  ;;  %v477_v57 = vld [vmem:[%s913_s26 + $0x20] sm:$0xf] }
  0x15   : > { %338 = vmatprep.subr.bf16.mxu1 %v860_v1  ;;  %v263_v31 = vrot.slane %v232_v25, 1  ;;  %v482_v32 = vpack.c.bf16 %v478_v27, %v478_v27  ;;  %v512_v33 = vrot.slane %v480_v21, 2  ;;  %v479_v59 = vpack.c.bf16 %v978_v30, %v475_v56  ;;  %v792_v7 = vld [vmem:[%s1061_s2] ss:$0 sm:$0xff] }
  0x16   : > { %v262_v26 = vrot.slane %v230_v23, 1  ;;  %v259_v47 = vrot.slane %v229_v43, 1  ;;  %v260_v48 = vrot.slane %v231_v44, 1  ;;  %v481_v60 = vpack.c.bf16 %v477_v57, %v477_v57 }
  0x17   : > { %443 = vmatpush1.bf16.msra.mxu0 %v826_v9  ;;  %339 = vmatpush1.bf16.msra.mxu1 %v840_v15  ;;  %v513_v36 = vrot.slane %v482_v32, 2  ;;  %v509_v62 = vrot.slane %v479_v59, 2 }
  0x18   : > { %444 = vmatprep.subr.bf16.mxu0 %v860_v1  ;;  %340 = vmatprep.subr.bf16.mxu1 %v860_v1  ;;  %v264_v35 = vsel %vm258_vm1, %v262_v26, %v263_v31  ;;  %v261_v50 = vsel %vm258_vm1, %v259_v47, %v260_v48  ;;  %v510_v63 = vrot.slane %v481_v60, 2 }
  0x19   : > { %749 = vmatprep.mubr.msk.bf16.mxu1 %vm326_vm0, %v264_v35  ;;  %v514_v41 = vsel %vm508_vm2, %v512_v33, %v513_v36 }
  0x1a   : > { %v511_v0 = vsel %vm508_vm2, %v509_v62, %v510_v63 }
  0x1b   : > { %445 = vmatpush1.bf16.msra.mxu0 %v827_v12  ;;  %341 = vmatpush1.bf16.msra.mxu1 %v842_v18 }
  0x1c   : > { %446 = vmatprep.subr.bf16.mxu0 %v860_v1  ;;  %342 = vmatprep.subr.bf16.mxu1 %v860_v1 }
  0x1f   : > { %447 = vmatpush1.bf16.msra.mxu0 %v828_v14  ;;  %343 = vmatpush1.bf16.msra.mxu1 %v844_v24 }
  0x20   : > { %448 = vmatprep.subr.bf16.mxu0 %v860_v1  ;;  %344 = vmatprep.subr.bf16.mxu1 %v860_v1 }
  0x23   : > { %449 = vmatpush1.bf16.msra.mxu0 %v829_v16  ;;  %345 = vmatpush1.bf16.msra.mxu1 %v846_v34 }
  0x24   : > { %450 = vmatprep.subr.bf16.mxu0 %v860_v1  ;;  %346 = vmatprep.subr.bf16.mxu1 %v860_v1 }
  0x27   : > { %451 = vmatpush1.bf16.msra.mxu0 %v830_v19  ;;  %347 = vmatpush1.bf16.msra.mxu1 %v848_v42 }
  0x28   : > { %452 = vmatprep.subr.bf16.mxu0 %v860_v1  ;;  %348 = vmatprep.subr.bf16.mxu1 %v860_v1 }
  0x2b   : > { %453 = vmatpush1.bf16.msra.mxu0 %v831_v28  ;;  %349 = vmatpush1.bf16.msra.mxu1 %v850_v46 }
  0x2c   : > { %579 = vmatprep.subr.bf16.mxu0 %v860_v1 }
  0x2e   : > { %467 = vmatmul.mubr.bf16.vlgmr.msra.gmra.mrb[0].mxu0 %v203_v37  ;;  %363 = vmatmul.mubr.bf16.vlgmr.msra.gmra.mrb[0].mxu1 %v261_v50 }
  0x2f   : > { %580 = vmatpush1.bf16.msra.mxu0 %v833_v40  ;;  %791 = vmatprep.mubr.msk.bf16.mxu0 %vm326_vm0, %v514_v41 }
  0x30   : > { %581 = vmatprep.subr.bf16.mxu0 %v860_v1 }
  0x33   : > { %582 = vmatpush1.bf16.msra.mxu0 %v835_v45 }
  0x34   : > { %583 = vmatprep.subr.bf16.mxu0 %v860_v1 }
  0x37   : > { %584 = vmatpush1.bf16.msra.mxu0 %v837_v49 }
  0x38   : > { %585 = vmatprep.subr.bf16.mxu0 %v860_v1 }
  0x3b   : > { %586 = vmatpush1.bf16.msra.mxu0 %v839_v51 }
  0x3c   : > { %587 = vmatprep.subr.bf16.mxu0 %v860_v1 }
  0x3f   : > { %588 = vmatpush1.bf16.msra.mxu0 %v841_v52 }
  0x40   : > { %589 = vmatprep.subr.bf16.mxu0 %v860_v1 }
  0x43   : > { %590 = vmatpush1.bf16.msra.mxu0 %v843_v53 }
  0x44   : > { %591 = vmatprep.subr.bf16.mxu0 %v860_v1 }
  0x47   : > { %592 = vmatpush1.bf16.msra.mxu0 %v845_v54 }
  0x48   : > { %593 = vmatprep.subr.bf16.mxu0 %v860_v1 }
  0x4b   : > { %594 = vmatpush1.bf16.msra.mxu0 %v847_v55 }
  0x4c   : > { %595 = vmatprep.subr.bf16.mxu0 %v860_v1 }
  0x4f   : > { %596 = vmatpush1.bf16.msra.mxu0 %v849_v58 }
  0x50   : > { %597 = vmatprep.subr.bf16.mxu0 %v860_v1  ;;  %v793_v1 = vld [vmem:[%s1062_s3] ss:$0 sm:$0xff] }
  0x53   : > { %598 = vmatpush1.bf16.msra.mxu0 %v851_v61 }
  0x56   : > { %612 = vmatmul.mubr.bf16.vlgmr.msra.gmra.mrb[0].mxu0 %v511_v0 }
 0x101   : > { %v364_v2 = vpop.f32.mrb[0].mxu1 }
 0x102   : > { %v366_v3 = vpop.f32.mrb[1].mxu1 }
 0x103   : > { %v367_v4 = vpop.f32.mrb[2].mxu1 }
 0x104   : > { %v369_v5 = vpop.f32.mrb[3].mxu1 }
 0x129   : > { %v613_v6 = vpop.f32.mrb[0].mxu0 }
 0x12a   : > { %v806_v8 = vadd.f32 %v613_v6, %v364_v2  ;;  %v615_v9 = vpop.f32.mrb[1].mxu0 }
 0x12b   : > { %v616_v10 = vpop.f32.mrb[2].mxu0 }
 0x12c   : > { %v629_v11 = vmul.f32 %v806_v8, %v792_v7  ;;  %v807_v12 = vadd.f32 %v616_v10, %v367_v4  ;;  %v618_v13 = vpop.f32.mrb[3].mxu0 }
 0x12e   : > { %v638_v14 = vadd.f32 %v793_v1, %v629_v11  ;;  %v630_v15 = vmul.f32 %v807_v12, %v792_v7 }
 0x130   : > { %v642_v16 = vmul.f32 0.2, %v638_v14  ;;  %v639_v17 = vadd.f32 %v793_v1, %v630_v15  ;;  %vm640_vm3 = vcmp.gt.f32.partialorder %v638_v14, 0.0 }
 0x132   : > { %vm641_vm4 = vcmp.gt.f32.partialorder %v639_v17, 0.0  ;;  %v643_v18 = vmul.f32 0.2, %v639_v17  ;;  %v644_v19 = vsel %vm640_vm3, %v638_v14, %v642_v16 }
 0x134   : > { %v645_v20 = vsel %vm641_vm4, %v639_v17, %v643_v18 }
 0x135   : > { %v804_v21 = vpack.c.bf16 %v645_v20, %v644_v19 }
 0x137   : > { %805 = vst [vmem:[%s197_s17] sm:$0xff] %v804_v21  }
 0x138 PF: > { %s14_s15 = sadd.s32 1, %s858_s15  }
 0x139   : > { %p11_p4 = scmp.ge.s32.totalorder %s14_s15, 4  }
 0x13b   :  { %13 = sbr.rel (!%p11_p4) target bundleno = 1 (0x1), region = 68 }

</bundles_post_ra>
